<compile_context>
chip_gen: v7x
topology: tpu7x:2x2x1
jax: 0.10.0
libtpu: 0.0.40
codegen_flags: <defaults>
</compile_context>

<pallas_src>
import jax
import jax.numpy as jnp
from jax.experimental import pallas as pl
from jax.experimental.pallas import tpu as pltpu

SEQ = 2
BATCH = 4
N_INPUTS = 3
N_NEURONS = 1          # kernel exploits H == 1 (degenerate matmuls -> scalar FMAs)

LANES = 128            # padded batch/lane width (full vreg lane dim)
ROWS = 8               # padded sublane rows of the xh slab (SEQ*N_INPUTS + 1 = 7 -> 8)
_W_PACKED = 8          # packed params: [w_ih0, w_ih1, w_ih2, w_hh, b_ih+b_hh, pad x3]


def rnn_kernel(w_ref, xh_ref, out_ref):
    """Unrolled 2-step RNNCell with batch on the (padded) lane axis.

    w_ref  : SMEM (8,)          f32  packed scalar parameters
    xh_ref : VMEM (8, 128)      f32  rows 0..2 = X[0]^T, rows 3..5 = X[1]^T,
                                      row 6 = h0^T, row 7 = zero pad
    out_ref: VMEM (SEQ, 128)    f32  row i = hidden state after step i
    """
    # Scalar parameter reads from SMEM (broadcast into VPU FMAs).
    w0 = w_ref[0]
    w1 = w_ref[1]
    w2 = w_ref[2]
    whh = w_ref[3]
    b = w_ref[4]

    xh = xh_ref[...]                          # (8, 128) -- single full-tile load
    h = xh[SEQ * N_INPUTS:SEQ * N_INPUTS + 1, :]   # (1, 128) initial hidden state

    for i in range(SEQ):                      # static unroll over the 2 time steps
        r = i * N_INPUTS
        # x @ W_ih^T as explicit per-lane FMAs (no XLU reduce, no MXU).
        xw = (xh[r:r + 1, :] * w0
              + xh[r + 1:r + 2, :] * w1
              + xh[r + 2:r + 3, :] * w2)      # (1, 128)
        h = jnp.tanh(xw + h * whh + b)        # (1, 128) -- tanh on the EUP
        # Lane-dense, static single-row store as soon as the step finishes.
        out_ref[i:i + 1, :] = h


@jax.jit
def clean_basic_rnn_forward(X, h0, w_ih, w_hh, b_ih, b_hh):
    """Returns (outputs, hy): outputs[i] == hidden state after step i (SEQ, B, H)."""
    # The kernel hard-codes the degenerate shapes; fail loudly if they change.
    assert X.shape == (SEQ, BATCH, N_INPUTS), X.shape
    assert h0.shape == (BATCH, N_NEURONS), h0.shape
    assert w_ih.shape == (N_NEURONS, N_INPUTS) and w_hh.shape == (N_NEURONS, N_NEURONS)
    assert N_NEURONS == 1 and N_INPUTS == 3

    X = X.astype(jnp.float32)
    h0 = h0.astype(jnp.float32)

    # --- pack the 5 scalar parameters with a single concat (one HLO) -----------
    w_packed = jnp.concatenate([
        w_ih.reshape(-1).astype(jnp.float32),
        w_hh.reshape(-1).astype(jnp.float32),
        (b_ih.astype(jnp.float32) + b_hh.astype(jnp.float32)).reshape(-1),
        jnp.zeros((_W_PACKED - N_INPUTS - 2,), jnp.float32),
    ])                                                                   # (8,)

    # --- pack X and h0 into one lane-major, tile-aligned slab ------------------
    x_lanes = jnp.transpose(X, (0, 2, 1)).reshape(SEQ * N_INPUTS, BATCH)  # (6, B)
    h_lanes = h0.reshape(BATCH, N_NEURONS).T                              # (1, B)
    xh_small = jnp.concatenate([x_lanes, h_lanes], axis=0)                # (7, B)
    xh = jnp.pad(xh_small,
                 ((0, ROWS - xh_small.shape[0]), (0, LANES - BATCH)))     # (8, 128)

    out = pl.pallas_call(
        rnn_kernel,
        out_shape=jax.ShapeDtypeStruct((SEQ, LANES), jnp.float32),
        in_specs=[
            pl.BlockSpec(memory_space=pltpu.MemorySpace.SMEM),   # packed params
            pl.BlockSpec(memory_space=pltpu.MemorySpace.VMEM),   # packed X + h0
        ],
        out_specs=pl.BlockSpec(memory_space=pltpu.MemorySpace.VMEM),
        cost_estimate=pl.CostEstimate(
            flops=2 * SEQ * BATCH * (N_INPUTS + 1),
            transcendentals=SEQ * BATCH,
            bytes_accessed=(ROWS * LANES + SEQ * LANES + _W_PACKED) * 4,
        ),
    )(w_packed, xh)

    # Single slice/reshape on the way out; hy is the last row.
    outputs = out[:, :BATCH].reshape(SEQ, BATCH, N_NEURONS)   # (SEQ, B, H)
    hy = outputs[SEQ - 1]                                     # (B, H)
    return outputs, hy


def _reference(X, h0, w_ih, w_hh, b_ih, b_hh):
    h = h0
    outs = []
    for i in range(SEQ):
        h = jnp.tanh(X[i] @ w_ih.T + b_ih + h @ w_hh.T + b_hh)
        outs.append(h)
    return outs, h


if __name__ == "__main__":
    key = jax.random.PRNGKey(0)
    kx, k1, k2, k3, k4 = jax.random.split(key, 5)

    # Deterministic parameter init (torch RNNCell: U(-1/sqrt(H), 1/sqrt(H)))
    bound = 1.0 / (N_NEURONS ** 0.5)
    w_ih = jax.random.uniform(k1, (N_NEURONS, N_INPUTS), jnp.float32, -bound, bound)
    w_hh = jax.random.uniform(k2, (N_NEURONS, N_NEURONS), jnp.float32, -bound, bound)
    b_ih = jax.random.uniform(k3, (N_NEURONS,), jnp.float32, -bound, bound)
    b_hh = jax.random.uniform(k4, (N_NEURONS,), jnp.float32, -bound, bound)

    # Inputs: X[i] must be (batch, n_inputs); module's self.hy starts at zeros.
    X = jax.random.normal(kx, (SEQ, BATCH, N_INPUTS), jnp.float32)
    h0 = jnp.zeros((BATCH, N_NEURONS), jnp.float32)

    outputs, hy = clean_basic_rnn_forward(X, h0, w_ih, w_hh, b_ih, b_hh)
    jax.block_until_ready(hy)

    ref_outputs, ref_hy = _reference(X, h0, w_ih, w_hh, b_ih, b_hh)
    assert jnp.allclose(outputs[0], ref_outputs[0], atol=1e-5)
    assert jnp.allclose(outputs[1], ref_outputs[1], atol=1e-5)
    assert jnp.allclose(hy, ref_hy, atol=1e-5)

    print("KERNEL_OK")
</pallas_src>

<mosaic_0001>
module attributes {stable_mosaic.version = 11 : i64} {
  func.func @rnn_kernel(%arg0: memref<8xf32, #tpu.memory_space<smem>>, %arg1: memref<8x128xf32, #tpu.memory_space<vmem>>, %arg2: memref<2x128xf32, #tpu.memory_space<vmem>>) attributes {dimension_semantics = [], scalar_prefetch = 0 : i64, scratch_operands = 0 : i64, tpu.core_type = #tpu.core_type<tc>} {
    %c0 = arith.constant 0 : index
    %0 = memref.load %arg0[%c0] : memref<8xf32, #tpu.memory_space<smem>>
    %c1 = arith.constant 1 : index
    %1 = memref.load %arg0[%c1] : memref<8xf32, #tpu.memory_space<smem>>
    %c2 = arith.constant 2 : index
    %2 = memref.load %arg0[%c2] : memref<8xf32, #tpu.memory_space<smem>>
    %c3 = arith.constant 3 : index
    %3 = memref.load %arg0[%c3] : memref<8xf32, #tpu.memory_space<smem>>
    %c4 = arith.constant 4 : index
    %4 = memref.load %arg0[%c4] : memref<8xf32, #tpu.memory_space<smem>>
    %c0_0 = arith.constant 0 : index
    %c0_1 = arith.constant 0 : index
    %5 = vector.load %arg1[%c0_0, %c0_1] : memref<8x128xf32, #tpu.memory_space<vmem>>, vector<8x128xf32>
    %6 = vector.extract_strided_slice %5 {offsets = [6, 0], sizes = [1, 128], strides = [1, 1]} : vector<8x128xf32> to vector<1x128xf32>
    %7 = vector.extract_strided_slice %5 {offsets = [0, 0], sizes = [1, 128], strides = [1, 1]} : vector<8x128xf32> to vector<1x128xf32>
    %8 = vector.broadcast %0 : f32 to vector<1x128xf32>
    %9 = arith.mulf %7, %8 : vector<1x128xf32>
    %10 = vector.extract_strided_slice %5 {offsets = [1, 0], sizes = [1, 128], strides = [1, 1]} : vector<8x128xf32> to vector<1x128xf32>
    %11 = vector.broadcast %1 : f32 to vector<1x128xf32>
    %12 = arith.mulf %10, %11 : vector<1x128xf32>
    %13 = arith.addf %9, %12 : vector<1x128xf32>
    %14 = vector.extract_strided_slice %5 {offsets = [2, 0], sizes = [1, 128], strides = [1, 1]} : vector<8x128xf32> to vector<1x128xf32>
    %15 = vector.broadcast %2 : f32 to vector<1x128xf32>
    %16 = arith.mulf %14, %15 : vector<1x128xf32>
    %17 = arith.addf %13, %16 : vector<1x128xf32>
    %18 = vector.broadcast %3 : f32 to vector<1x128xf32>
    %19 = arith.mulf %6, %18 : vector<1x128xf32>
    %20 = arith.addf %17, %19 : vector<1x128xf32>
    %21 = vector.broadcast %4 : f32 to vector<1x128xf32>
    %22 = arith.addf %20, %21 : vector<1x128xf32>
    %23 = math.tanh %22 : vector<1x128xf32>
    %c0_2 = arith.constant 0 : index
    %c0_3 = arith.constant 0 : index
    %24 = vector.load %arg2[%c0_2, %c0_3] : memref<2x128xf32, #tpu.memory_space<vmem>>, vector<1x128xf32>
    tpu.vector_store %arg2[%c0_2, %c0_3], %23 {strides = array<i32>} : memref<2x128xf32, #tpu.memory_space<vmem>>, vector<1x128xf32>,
    %25 = vector.extract_strided_slice %5 {offsets = [3, 0], sizes = [1, 128], strides = [1, 1]} : vector<8x128xf32> to vector<1x128xf32>
    %26 = vector.broadcast %0 : f32 to vector<1x128xf32>
    %27 = arith.mulf %25, %26 : vector<1x128xf32>
    %28 = vector.extract_strided_slice %5 {offsets = [4, 0], sizes = [1, 128], strides = [1, 1]} : vector<8x128xf32> to vector<1x128xf32>
    %29 = vector.broadcast %1 : f32 to vector<1x128xf32>
    %30 = arith.mulf %28, %29 : vector<1x128xf32>
    %31 = arith.addf %27, %30 : vector<1x128xf32>
    %32 = vector.extract_strided_slice %5 {offsets = [5, 0], sizes = [1, 128], strides = [1, 1]} : vector<8x128xf32> to vector<1x128xf32>
    %33 = vector.broadcast %2 : f32 to vector<1x128xf32>
    %34 = arith.mulf %32, %33 : vector<1x128xf32>
    %35 = arith.addf %31, %34 : vector<1x128xf32>
    %36 = vector.broadcast %3 : f32 to vector<1x128xf32>
    %37 = arith.mulf %23, %36 : vector<1x128xf32>
    %38 = arith.addf %35, %37 : vector<1x128xf32>
    %39 = vector.broadcast %4 : f32 to vector<1x128xf32>
    %40 = arith.addf %38, %39 : vector<1x128xf32>
    %41 = math.tanh %40 : vector<1x128xf32>
    %c1_4 = arith.constant 1 : index
    %c0_5 = arith.constant 0 : index
    %42 = vector.load %arg2[%c1_4, %c0_5] : memref<2x128xf32, #tpu.memory_space<vmem>>, vector<1x128xf32>
    tpu.vector_store %arg2[%c1_4, %c0_5], %41 {strides = array<i32>} : memref<2x128xf32, #tpu.memory_space<vmem>>, vector<1x128xf32>,
    return
  }
}

</mosaic_0001>

<bundles_post_ra>
// kernel: clean_basic_rnn_forward.1
= control target key start
LH: loop header
LB: loop body
LE: loop exit
PB: predicated region body
PF: predicated region fallthrough
CT: control target
= control target key end

     0   :  { %7 = vsyncpa [#allocation3], 0  ;;  %s118_s0 = inlined_call_operand.vmem [shape: f32[8], index: 0, kind: input, shape index: {}]   ;;  %s119_s1 = inlined_call_operand.vmem [shape: f32[8,128], index: 1, kind: input, shape index: {}]   ;;  %s120_s2 = inlined_call_operand.vmem [shape: f32[2,128], index: 2, kind: output, shape index: {}]  }
   0x1   :  { %s14_s11 = sshll.u32 %s118_s0, 4  ;;  %s15_s11 = int_to_ptr.vmem [resolvable:$true] %s14_s11 }
   0x2   :  { %s76_s12 = scalar_lea.vmem %s15_s11, 16  ;;  %p81_p1 = scmp.lt.s32.totalorder %s15_s11, %s15_s11 }
   0x3   :  { %p77_p0 = scmp.ne.s32.totalorder %s15_s11, %s76_s12  ;;  %p82_p2 = scmp.lt.s32.totalorder %s76_s12, %s76_s12 }
   0x5   :  { %p83_p3 = por %p82_p2, %p81_p1 }
   0x7   :  { %p84_p4 = pnand %p83_p3, %p77_p0 }
   0x9   :  { %87 = shalt.err (!%p84_p4)
}
   0xa   :  { %s90_s13 = smov [#allocation2]  }
   0xb   :  { %17 = dma.vmem_to_smem %s15_s11, 16, %s90_s13, [#allocation3]  }
   0xc   :  { %88 = dma.done.wait [#allocation3], 16  }
   0xd   :  { %89 = vsyncadd [#allocation3], 4294967280 }
   0xe   :  { %23 = sfence }
   0xf   :  { %s24_s14 = sld [smem:[#allocation2]]  ;;  %s67_s15 = sld [smem:[#allocation2 + $0x1]]  ;;  %v29_v0 = vld [vmem:[%s119_s1] sm:$0xff] }
  0x10   :  { %s68_s16 = sld [smem:[#allocation2 + $0x2]]  ;;  %s69_s17 = sld [smem:[#allocation2 + $0x3]] }
  0x11   :  { %s70_s0 = sld [smem:[#allocation2 + $0x4]] }
  0x15   :  { %v30_v1 = vstv %s24_s14  ;;  %v32_v2 = vstv %s67_s15 }
  0x16   :  { %v31_v3 = vmul.f32 %v30_v1, %v29_v0  ;;  %v33_v4 = vmul.f32 %v32_v2, %v29_v0  ;;  %v38_v5 = vstv %s68_s16  ;;  %v44_v6 = vstv %s69_s17 }
  0x17   :  { %v39_v7 = vmul.f32 %v38_v5, %v29_v0  ;;  %v45_v8 = vmul.f32 %v44_v6, %v29_v0  ;;  %v50_v14 = vstv %s70_s0 }
  0x18   :  { %v35_v9 = vrot.slane %v33_v4, 1 }
  0x19   :  { %v41_v10 = vrot.slane %v39_v7, 2  ;;  %v47_v12 = vrot.slane %v45_v8, 6 }
  0x1a   :  { %v37_v11 = vadd.f32 %v35_v9, %v31_v3 }
  0x1c   :  { %v43_v13 = vadd.f32 %v41_v10, %v37_v11 }
  0x1e   :  { %v49_v15 = vadd.f32 %v47_v12, %v43_v13 }
  0x20   :  { %v51_v16 = vadd.f32 %v50_v14, %v49_v15 }
  0x22   :  { %72 = vtanh.f32 %v51_v16 }
  0x2c   :  { %v73_v17 = vpop.eup %72 }
  0x2d   :  { %53 = vst [vmem:[%s120_s2] sm:$0x1] %v73_v17  ;;  %v54_v18 = vmul.f32 %v73_v17, %v44_v6 }
  0x2f   :  { %v56_v19 = vrot.slane %v54_v18, 5 }
  0x31   :  { %v58_v20 = vadd.f32 %v56_v19, %v43_v13 }
  0x33   :  { %v59_v21 = vadd.f32 %v58_v20, %v50_v14 }
  0x35   :  { %74 = vtanh.f32 %v59_v21 }
  0x3f   :  { %v75_v22 = vpop.eup %74 }
  0x40   :  { %61 = vst [vmem:[%s120_s2 - $0x2] sm:$0x8] %v75_v22 }
  0x41   :  { %66 = vsyncpa [#allocation3], 1 }

</bundles_post_ra>
